<compile_context>
chip_gen: v5e
topology: v5e:2x2
jax: 0.10.0
libtpu: 0.0.40
codegen_flags: <defaults>
</compile_context>

<pallas_src>
import functools

import jax
import jax.numpy as jnp
from jax import lax
from jax.experimental import pallas as pl
from jax.experimental.pallas import tpu as pltpu

LN_EPS = 1e-5
_INV_SQRT2 = 0.7071067811865475244


def _round_up(a, b):
    return (a + b - 1) // b * b


def _gelu(x, approximate):
    if approximate:
        # tanh GELU lowers through the EUP slot (co-issues with VPU/MXU) but
        # differs from PyTorch's exact nn.GELU() by ~1e-3; opt-in only.
        return jax.nn.gelu(x, approximate=True)
    # PyTorch nn.GELU() default: exact erf-based GELU.
    return 0.5 * x * (1.0 + lax.erf(x * _INV_SQRT2))


def _ln_rowwise(h, gamma, beta):
    """Standard LayerNorm over the full last axis (XLU reduce)."""
    mean = jnp.mean(h, axis=-1, keepdims=True)
    c = h - mean
    var = jnp.mean(c * c, axis=-1, keepdims=True)
    return c * lax.rsqrt(var + LN_EPS) * gamma + beta


def _ln_segmented(h, seg_avg, gamma, beta):
    """LayerNorm over independent lane groups of a packed row.

    seg_avg is a (W, W) block matrix holding 1/group_size inside each diagonal
    group block, so `h @ seg_avg` broadcasts each group's mean back to all of
    that group's lanes.  Runs on the mostly-idle MXU instead of the XLU and
    never mixes lanes across groups (groups = packed logical rows).
    """
    mu = jnp.dot(h, seg_avg, preferred_element_type=jnp.float32)
    c = h - mu
    var = jnp.dot(c * c, seg_avg, preferred_element_type=jnp.float32)
    return c * lax.rsqrt(var + LN_EPS) * gamma + beta


def _trunk(x_ref, w1_ref, b1_ref, g1_ref, be1_ref,
           w2_ref, b2_ref, g2_ref, be2_ref, ln, gelu):
    """Linear -> GELU -> LN -> Linear -> GELU -> LN (math in f32)."""
    x = x_ref[...]
    h = jnp.dot(x, w1_ref[...], preferred_element_type=jnp.float32)
    h = gelu(h + b1_ref[...].astype(jnp.float32))
    h = ln(h, g1_ref[...].astype(jnp.float32), be1_ref[...].astype(jnp.float32))
    h = jnp.dot(h, w2_ref[...], preferred_element_type=jnp.float32)
    h = gelu(h + b2_ref[...].astype(jnp.float32))
    h = ln(h, g2_ref[...].astype(jnp.float32), be2_ref[...].astype(jnp.float32))
    return x, h


def _row_epilogue(x, h, w3_ref, wd_ref, bias_ref, o_ref):
    """Projection + residual as transposed MXU dots -> lane-dense (q, tm) rows."""
    dn = (((1,), (1,)), ((), ()))  # contract last dims: A @ B^T
    proj = lax.dot_general(w3_ref[...].astype(jnp.float32), h, dn,
                           preferred_element_type=jnp.float32)
    res = lax.dot_general(wd_ref[...].astype(jnp.float32),
                          x.astype(jnp.float32), dn,
                          preferred_element_type=jnp.float32)
    out = proj + res + bias_ref[...].astype(jnp.float32)      # (q, tm)
    o_ref[...] = out[None].astype(o_ref.dtype)                # (1, q, tm)


def _kernel_row_packed(x_ref, w1_ref, b1_ref, g1_ref, be1_ref,
                       w2_ref, b2_ref, g2_ref, be2_ref,
                       seg_ref, w3_ref, wd_ref, bias_ref, o_ref,
                       *, approximate_gelu):
    gelu = functools.partial(_gelu, approximate=approximate_gelu)
    seg = seg_ref[...].astype(jnp.float32)
    ln = lambda h, g, b: _ln_segmented(h, seg, g, b)
    x, h = _trunk(x_ref, w1_ref, b1_ref, g1_ref, be1_ref,
                  w2_ref, b2_ref, g2_ref, be2_ref, ln, gelu)
    _row_epilogue(x, h, w3_ref, wd_ref, bias_ref, o_ref)


def _kernel_row(x_ref, w1_ref, b1_ref, g1_ref, be1_ref,
                w2_ref, b2_ref, g2_ref, be2_ref,
                w3_ref, wd_ref, bias_ref, o_ref, *, approximate_gelu):
    gelu = functools.partial(_gelu, approximate=approximate_gelu)
    x, h = _trunk(x_ref, w1_ref, b1_ref, g1_ref, be1_ref,
                  w2_ref, b2_ref, g2_ref, be2_ref, _ln_rowwise, gelu)
    _row_epilogue(x, h, w3_ref, wd_ref, bias_ref, o_ref)


def _kernel_columns(x_ref, w1_ref, b1_ref, g1_ref, be1_ref,
                    w2_ref, b2_ref, g2_ref, be2_ref,
                    w3_ref, b3_ref, wd_ref, bd_ref, o_ref, *, approximate_gelu):
    gelu = functools.partial(_gelu, approximate=approximate_gelu)
    x, h = _trunk(x_ref, w1_ref, b1_ref, g1_ref, be1_ref,
                  w2_ref, b2_ref, g2_ref, be2_ref, _ln_rowwise, gelu)
    out = jnp.dot(h, w3_ref[...], preferred_element_type=jnp.float32)
    out = out + b3_ref[...].astype(jnp.float32)
    res = jnp.dot(x, wd_ref[...], preferred_element_type=jnp.float32)
    res = res + bd_ref[...].astype(jnp.float32)
    o_ref[...] = (out + res).astype(o_ref.dtype)


def _block_diag(block, copies):
    r, c = block.shape
    out = jnp.zeros((copies * r, copies * c), block.dtype)
    for g in range(copies):
        out = out.at[g * r:(g + 1) * r, g * c:(g + 1) * c].set(block)
    return out


def bottleneck_judge_ii(x, params, *, tile_rows=8192, approx_gelu=False):
    """x: (..., in_places) -> (..., out_places)."""
    w1, w2, w3, wd = params["w1"], params["w2"], params["w3"], params["wd"]
    in_places, hidden = w1.shape
    out_places = w3.shape[1]

    lead = x.shape[:-1]
    xf = x.reshape(-1, in_places)
    n = xf.shape[0]

    # ---- lane packing decision ------------------------------------------
    pack = 1
    if (out_places == 1 and max(in_places, hidden) <= 64
            and 128 % in_places == 0 and 128 % hidden == 0):
        pack = 128 // max(in_places, hidden)

    wx = pack * in_places      # packed x row width (lanes)
    wh = pack * hidden         # packed hidden row width (lanes)
    n_rows = pl.cdiv(n, pack)  # physical (packed) rows before tile padding

    # ---- tile size --------------------------------------------------------
    # Big tiles amortize the ~0.35us/grid-step overhead; a VMEM-aware cap on
    # tm keeps double-buffered x + f32 temporaries + resident weights well
    # inside v7x's 64 MiB VMEM; the cdiv(n_rows, 2) term keeps >= 2 grid steps
    # whenever rows allow so ("parallel",) shards across both v7x TensorCores.
    x_isz = jnp.dtype(x.dtype).itemsize
    p_isz = jnp.dtype(w1.dtype).itemsize
    param_bytes = 2 * p_isz * (wx * wh + 2 * wh * wh + 8 * wh + 2 * wx + 16)
    per_row_bytes = 2 * x_isz * wx + 6 * 4 * wh
    budget = 40 * 1024 * 1024
    tm_vmem = max(8, (budget - param_bytes) // per_row_bytes)

    tm = min(int(tile_rows), int(tm_vmem), _round_up(pl.cdiv(n_rows, 2), 8))
    tm = max(8, _round_up(tm, 8))
    grid_n = pl.cdiv(n_rows, tm)
    n_rows_pad = grid_n * tm
    n_logical_pad = n_rows_pad * pack

    est_vmem = param_bytes + per_row_bytes * tm + 2 * 4 * 8 * tm
    vmem_limit = None
    if est_vmem > 14 * 1024 * 1024:  # above the smallest default scoped limit
        vmem_limit = int(min(est_vmem * 5 // 4 + (2 << 20), 112 << 20))
    compiler_params = pltpu.CompilerParams(
        dimension_semantics=("parallel",), vmem_limit_bytes=vmem_limit)

    # Zero padding: padded logical rows pass through LayerNorm of an all-zero
    # vector, which stays finite because LN_EPS > 0; they are sliced off below.
    if n_logical_pad != n:
        xf = jnp.pad(xf, ((0, n_logical_pad - n), (0, 0)))
    xp = xf.reshape(n_rows_pad, wx)

    x_spec = pl.BlockSpec((tm, wx), lambda i: (i, 0))

    def const(shape):
        # Constant across the grid: stays VMEM-resident (a few KiB here).
        # TODO(synk): add pipeline_mode=pl.Buffered(1) (and move the (1,1)
        # scalars to SMEM) once single-buffered constant operands are verified
        # on all deployed jaxlib versions; only matters for very large hidden.
        return pl.BlockSpec(shape, lambda i: (0,) * len(shape))

    if out_places == 1:
        dt = w1.dtype
        if pack > 1:
            w1p = _block_diag(w1, pack)                      # (wx, wh)
            w2p = _block_diag(w2, pack)                      # (wh, wh)
            tile_h = lambda v: jnp.tile(v.reshape(1, hidden), (1, pack))
            b1p, g1p, be1p = (tile_h(params["b1"]), tile_h(params["g1"]),
                              tile_h(params["be1"]))
            b2p, g2p, be2p = (tile_h(params["b2"]), tile_h(params["g2"]),
                              tile_h(params["be2"]))
            gid = jnp.repeat(jnp.arange(pack), hidden)
            seg = ((gid[:, None] == gid[None, :]).astype(jnp.float32)
                   / float(hidden))                          # (wh, wh)
            w3r = _block_diag(w3.reshape(1, hidden), pack)   # (pack, wh)
            wdr = _block_diag(wd.reshape(1, in_places), pack)  # (pack, wx)
        else:
            w1p, w2p = w1, w2
            b1p, g1p, be1p = params["b1"], params["g1"], params["be1"]
            b2p, g2p, be2p = params["b2"], params["g2"], params["be2"]
            w3r = w3.reshape(1, hidden)
            wdr = wd.reshape(1, in_places)

        # Pad selector rows to a sublane-aligned count so the MXU result and
        # the lane-dense store are fully tile-aligned; extra rows are zeros.
        q = _round_up(pack, 8)
        w3r = jnp.pad(w3r, ((0, q - w3r.shape[0]), (0, 0))).astype(dt)
        wdr = jnp.pad(wdr, ((0, q - wdr.shape[0]), (0, 0))).astype(dt)
        bias = (params["b3"] + params["bd"]).reshape(1, 1).astype(jnp.float32)

        args = [xp, w1p, b1p, g1p, be1p, w2p, b2p, g2p, be2p]
        specs = [x_spec,
                 const((wx, wh)), const((1, wh)), const((1, wh)), const((1, wh)),
                 const((wh, wh)), const((1, wh)), const((1, wh)), const((1, wh))]
        if pack > 1:
            kernel = functools.partial(_kernel_row_packed,
                                       approximate_gelu=approx_gelu)
            args += [seg, w3r, wdr, bias]
            specs += [const((wh, wh)), const((q, wh)), const((q, wx)),
                      const((1, 1))]
        else:
            kernel = functools.partial(_kernel_row,
                                       approximate_gelu=approx_gelu)
            args += [w3r, wdr, bias]
            specs += [const((q, wh)), const((q, wx)), const((1, 1))]

        out = pl.pallas_call(
            kernel,
            out_shape=jax.ShapeDtypeStruct((grid_n, q, tm), x.dtype),
            grid_spec=pltpu.PrefetchScalarGridSpec(
                num_scalar_prefetch=0, grid=(grid_n,),
                in_specs=specs,
                out_specs=pl.BlockSpec((1, q, tm), lambda i: (i, 0, 0))),
            compiler_params=compiler_params,
        )(*args)

        # out[i, g, r] holds logical row (i*tm + r)*pack + g (g < pack valid).
        out = out[:, :pack, :].transpose(0, 2, 1).reshape(n_logical_pad, 1)
        return out[:n].reshape(*lead, out_places)

    # ---- general out_places > 1 path (column-layout output) ---------------
    kernel = functools.partial(_kernel_columns, approximate_gelu=approx_gelu)
    args = [xp, w1, params["b1"], params["g1"], params["be1"],
            w2, params["b2"], params["g2"], params["be2"],
            w3, params["b3"], wd, params["bd"]]
    specs = [x_spec,
             const((in_places, hidden)), const((1, hidden)),
             const((1, hidden)), const((1, hidden)),
             const((hidden, hidden)), const((1, hidden)),
             const((1, hidden)), const((1, hidden)),
             const((hidden, out_places)), const((1, out_places)),
             const((in_places, out_places)), const((1, out_places))]
    out = pl.pallas_call(
        kernel,
        out_shape=jax.ShapeDtypeStruct((n_rows_pad, out_places), x.dtype),
        grid_spec=pltpu.PrefetchScalarGridSpec(
            num_scalar_prefetch=0, grid=(grid_n,),
            in_specs=specs,
            out_specs=pl.BlockSpec((tm, out_places), lambda i: (i, 0))),
        compiler_params=compiler_params,
    )(*args)
    return out[:n].reshape(*lead, out_places)


def init_params(key, in_places, hidden_places, out_places=1, dtype=jnp.float32):
    ks = jax.random.split(key, 6)
    scale = 0.02

    def lin(k, fan_in, fan_out):
        kw, kb = jax.random.split(k)
        w = (scale * jax.random.normal(kw, (fan_in, fan_out))).astype(dtype)
        b = (scale * jax.random.normal(kb, (1, fan_out))).astype(dtype)
        return w, b

    w1, b1 = lin(ks[0], in_places, hidden_places)
    w2, b2 = lin(ks[1], hidden_places, hidden_places)
    w3, b3 = lin(ks[2], hidden_places, out_places)
    wd, bd = lin(ks[3], in_places, out_places)
    # Non-trivial LN affine params so the tiled/segmented paths are exercised.
    g1 = (1.0 + 0.1 * jax.random.normal(ks[4], (1, hidden_places))).astype(dtype)
    g2 = (1.0 + 0.1 * jax.random.normal(ks[5], (1, hidden_places))).astype(dtype)
    be1 = (0.1 * jax.random.normal(ks[4], (1, hidden_places))).astype(dtype)
    be2 = (0.1 * jax.random.normal(ks[5], (1, hidden_places))).astype(dtype)
    return dict(w1=w1, b1=b1, g1=g1, be1=be1,
                w2=w2, b2=b2, g2=g2, be2=be2,
                w3=w3, b3=b3, wd=wd, bd=bd)


def reference_forward(x, p):
    # Pure-JAX reference (same math as the PyTorch module).
    def ln(v, g, b):
        m = jnp.mean(v, -1, keepdims=True)
        var = jnp.mean(jnp.square(v - m), -1, keepdims=True)
        return (v - m) / jnp.sqrt(var + LN_EPS) * g + b

    gelu = lambda v: 0.5 * v * (1.0 + lax.erf(v / jnp.sqrt(2.0)))
    h = gelu(x @ p["w1"] + p["b1"])
    h = ln(h, p["g1"], p["be1"])
    h = gelu(h @ p["w2"] + p["b2"])
    h = ln(h, p["g2"], p["be2"])
    out = h @ p["w3"] + p["b3"]
    res = x @ p["wd"] + p["bd"]
    return out + res


if __name__ == "__main__":
    key = jax.random.PRNGKey(0)
    k_x, k_p, k_p2, k_x3, k_p3 = jax.random.split(key, 5)

    # ---- packed path: in = hidden = 32 -> 4 logical rows per 128-lane row --
    batch, seq, in_places, hidden_places = 2, 37, 32, 32
    x = jax.random.normal(k_x, (batch, seq, in_places), dtype=jnp.float32)
    params = init_params(k_p, in_places, hidden_places, 1)
    y = bottleneck_judge_ii(x, params)                      # default tiling
    y_small = bottleneck_judge_ii(x, params, tile_rows=8)   # multi-step grid
    y_ref = reference_forward(x.reshape(-1, in_places), params).reshape(
        batch, seq, 1)

    # ---- column path: out_places = 3 ---------------------------------------
    params3 = init_params(k_p2, in_places, hidden_places, 3)
    yc = bottleneck_judge_ii(x, params3)
    yc_ref = reference_forward(x.reshape(-1, in_places), params3).reshape(
        batch, seq, 3)

    # ---- un-packable dims (in=24, hidden=40) -> plain lane-dense row path --
    x3 = jax.random.normal(k_x3, (batch, seq, 24), dtype=jnp.float32)
    paramsu = init_params(k_p3, 24, 40, 1)
    yu = bottleneck_judge_ii(x3, paramsu)
    yu_ref = reference_forward(x3.reshape(-1, 24), paramsu).reshape(
        batch, seq, 1)

    jax.block_until_ready((y, y_small, yc, yu))

    assert y.shape == (batch, seq, 1)
    assert y_small.shape == (batch, seq, 1)
    assert yc.shape == (batch, seq, 3)
    assert yu.shape == (batch, seq, 1)
    for name, got, ref in (("packed", y, y_ref),
                           ("packed-small-tile", y_small, y_ref),
                           ("columns", yc, yc_ref),
                           ("plain-row", yu, yu_ref)):
        err = float(jnp.max(jnp.abs(got - ref)))
        assert jnp.allclose(got, ref, atol=5e-4, rtol=5e-4), (name, err)

    print("KERNEL_OK")
</pallas_src>

<mosaic_0001>
module attributes {stable_mosaic.version = 11 : i64} {
  func.func @_kernel_row_packed(%arg0: i32, %arg1: memref<16x128xf32, #tpu.memory_space<vmem>>, %arg2: memref<128x128xf32, #tpu.memory_space<vmem>>, %arg3: memref<1x128xf32, #tpu.memory_space<vmem>>, %arg4: memref<1x128xf32, #tpu.memory_space<vmem>>, %arg5: memref<1x128xf32, #tpu.memory_space<vmem>>, %arg6: memref<128x128xf32, #tpu.memory_space<vmem>>, %arg7: memref<1x128xf32, #tpu.memory_space<vmem>>, %arg8: memref<1x128xf32, #tpu.memory_space<vmem>>, %arg9: memref<1x128xf32, #tpu.memory_space<vmem>>, %arg10: memref<128x128xf32, #tpu.memory_space<vmem>>, %arg11: memref<8x128xf32, #tpu.memory_space<vmem>>, %arg12: memref<8x128xf32, #tpu.memory_space<vmem>>, %arg13: memref<1x1xf32, #tpu.memory_space<vmem>>, %arg14: memref<1x8x16xf32, #tpu.memory_space<vmem>>) attributes {dimension_semantics = [#tpu.dimension_semantics<parallel>], iteration_bounds = array<i64: 2>, scalar_prefetch = 0 : i64, scratch_operands = 0 : i64, tpu.core_type = #tpu.core_type<tc>, window_params = [{transform_indices = @transform_0, window_bounds = array<i64: 16, 128>}, {pipeline_mode = #tpu.pipeline_mode<synchronous>, transform_indices = @transform_1, window_bounds = array<i64: 128, 128>}, {pipeline_mode = #tpu.pipeline_mode<synchronous>, transform_indices = @transform_2, window_bounds = array<i64: 1, 128>}, {pipeline_mode = #tpu.pipeline_mode<synchronous>, transform_indices = @transform_3, window_bounds = array<i64: 1, 128>}, {pipeline_mode = #tpu.pipeline_mode<synchronous>, transform_indices = @transform_4, window_bounds = array<i64: 1, 128>}, {pipeline_mode = #tpu.pipeline_mode<synchronous>, transform_indices = @transform_5, window_bounds = array<i64: 128, 128>}, {pipeline_mode = #tpu.pipeline_mode<synchronous>, transform_indices = @transform_6, window_bounds = array<i64: 1, 128>}, {pipeline_mode = #tpu.pipeline_mode<synchronous>, transform_indices = @transform_7, window_bounds = array<i64: 1, 128>}, {pipeline_mode = #tpu.pipeline_mode<synchronous>, transform_indices = @transform_8, window_bounds = array<i64: 1, 128>}, {pipeline_mode = #tpu.pipeline_mode<synchronous>, transform_indices = @transform_9, window_bounds = array<i64: 128, 128>}, {pipeline_mode = #tpu.pipeline_mode<synchronous>, transform_indices = @transform_10, window_bounds = array<i64: 8, 128>}, {pipeline_mode = #tpu.pipeline_mode<synchronous>, transform_indices = @transform_11, window_bounds = array<i64: 8, 128>}, {pipeline_mode = #tpu.pipeline_mode<synchronous>, transform_indices = @transform_12, window_bounds = array<i64: 1, 1>}, {transform_indices = @transform_13, window_bounds = array<i64: 1, 8, 16>}]} {
    %c0 = arith.constant 0 : index
    %c0_0 = arith.constant 0 : index
    %0 = vector.load %arg10[%c0, %c0_0] : memref<128x128xf32, #tpu.memory_space<vmem>>, vector<128x128xf32>
    %c0_1 = arith.constant 0 : index
    %c0_2 = arith.constant 0 : index
    %1 = vector.load %arg1[%c0_1, %c0_2] : memref<16x128xf32, #tpu.memory_space<vmem>>, vector<16x128xf32>
    %c0_3 = arith.constant 0 : index
    %c0_4 = arith.constant 0 : index
    %2 = vector.load %arg2[%c0_3, %c0_4] : memref<128x128xf32, #tpu.memory_space<vmem>>, vector<128x128xf32>
    %cst = arith.constant dense<0.000000e+00> : vector<16x128xf32>
    %3 = tpu.matmul %1, %2, %cst {dimension_numbers = #tpu.dot_dimension_numbers<[1], [0], [0], [1], [0, 0, 1, 1], [], []>} : vector<16x128xf32>, vector<128x128xf32>, vector<16x128xf32> -> vector<16x128xf32>
    %c0_5 = arith.constant 0 : index
    %c0_6 = arith.constant 0 : index
    %4 = vector.load %arg3[%c0_5, %c0_6] : memref<1x128xf32, #tpu.memory_space<vmem>>, vector<1x128xf32>
    %5 = vector.broadcast %4 : vector<1x128xf32> to vector<16x128xf32>
    %6 = arith.addf %3, %5 : vector<16x128xf32>
    %cst_7 = arith.constant 5.000000e-01 : f32
    %7 = vector.broadcast %cst_7 : f32 to vector<16x128xf32>
    %8 = arith.mulf %7, %6 : vector<16x128xf32>
    %cst_8 = arith.constant 0.707106769 : f32
    %9 = vector.broadcast %cst_8 : f32 to vector<16x128xf32>
    %10 = arith.mulf %6, %9 : vector<16x128xf32>
    %11 = math.erf %10 : vector<16x128xf32>
    %cst_9 = arith.constant 1.000000e+00 : f32
    %12 = vector.broadcast %cst_9 : f32 to vector<16x128xf32>
    %13 = arith.addf %12, %11 : vector<16x128xf32>
    %14 = arith.mulf %8, %13 : vector<16x128xf32>
    %c0_10 = arith.constant 0 : index
    %c0_11 = arith.constant 0 : index
    %15 = vector.load %arg4[%c0_10, %c0_11] : memref<1x128xf32, #tpu.memory_space<vmem>>, vector<1x128xf32>
    %c0_12 = arith.constant 0 : index
    %c0_13 = arith.constant 0 : index
    %16 = vector.load %arg5[%c0_12, %c0_13] : memref<1x128xf32, #tpu.memory_space<vmem>>, vector<1x128xf32>
    %cst_14 = arith.constant dense<0.000000e+00> : vector<16x128xf32>
    %17 = tpu.matmul %14, %0, %cst_14 {dimension_numbers = #tpu.dot_dimension_numbers<[1], [0], [0], [1], [0, 0, 1, 1], [], []>} : vector<16x128xf32>, vector<128x128xf32>, vector<16x128xf32> -> vector<16x128xf32>
    %18 = arith.subf %14, %17 : vector<16x128xf32>
    %19 = arith.mulf %18, %18 : vector<16x128xf32>
    %cst_15 = arith.constant dense<0.000000e+00> : vector<16x128xf32>
    %20 = tpu.matmul %19, %0, %cst_15 {dimension_numbers = #tpu.dot_dimension_numbers<[1], [0], [0], [1], [0, 0, 1, 1], [], []>} : vector<16x128xf32>, vector<128x128xf32>, vector<16x128xf32> -> vector<16x128xf32>
    %cst_16 = arith.constant 9.99999974E-6 : f32
    %21 = vector.broadcast %cst_16 : f32 to vector<16x128xf32>
    %22 = arith.addf %20, %21 : vector<16x128xf32>
    %23 = math.rsqrt %22 : vector<16x128xf32>
    %24 = arith.mulf %18, %23 : vector<16x128xf32>
    %25 = vector.broadcast %15 : vector<1x128xf32> to vector<16x128xf32>
    %26 = arith.mulf %24, %25 : vector<16x128xf32>
    %27 = vector.broadcast %16 : vector<1x128xf32> to vector<16x128xf32>
    %28 = arith.addf %26, %27 : vector<16x128xf32>
    %c0_17 = arith.constant 0 : index
    %c0_18 = arith.constant 0 : index
    %29 = vector.load %arg6[%c0_17, %c0_18] : memref<128x128xf32, #tpu.memory_space<vmem>>, vector<128x128xf32>
    %cst_19 = arith.constant dense<0.000000e+00> : vector<16x128xf32>
    %30 = tpu.matmul %28, %29, %cst_19 {dimension_numbers = #tpu.dot_dimension_numbers<[1], [0], [0], [1], [0, 0, 1, 1], [], []>} : vector<16x128xf32>, vector<128x128xf32>, vector<16x128xf32> -> vector<16x128xf32>
    %c0_20 = arith.constant 0 : index
    %c0_21 = arith.constant 0 : index
    %31 = vector.load %arg7[%c0_20, %c0_21] : memref<1x128xf32, #tpu.memory_space<vmem>>, vector<1x128xf32>
    %32 = vector.broadcast %31 : vector<1x128xf32> to vector<16x128xf32>
    %33 = arith.addf %30, %32 : vector<16x128xf32>
    %cst_22 = arith.constant 5.000000e-01 : f32
    %34 = vector.broadcast %cst_22 : f32 to vector<16x128xf32>
    %35 = arith.mulf %34, %33 : vector<16x128xf32>
    %cst_23 = arith.constant 0.707106769 : f32
    %36 = vector.broadcast %cst_23 : f32 to vector<16x128xf32>
    %37 = arith.mulf %33, %36 : vector<16x128xf32>
    %38 = math.erf %37 : vector<16x128xf32>
    %cst_24 = arith.constant 1.000000e+00 : f32
    %39 = vector.broadcast %cst_24 : f32 to vector<16x128xf32>
    %40 = arith.addf %39, %38 : vector<16x128xf32>
    %41 = arith.mulf %35, %40 : vector<16x128xf32>
    %c0_25 = arith.constant 0 : index
    %c0_26 = arith.constant 0 : index
    %42 = vector.load %arg8[%c0_25, %c0_26] : memref<1x128xf32, #tpu.memory_space<vmem>>, vector<1x128xf32>
    %c0_27 = arith.constant 0 : index
    %c0_28 = arith.constant 0 : index
    %43 = vector.load %arg9[%c0_27, %c0_28] : memref<1x128xf32, #tpu.memory_space<vmem>>, vector<1x128xf32>
    %cst_29 = arith.constant dense<0.000000e+00> : vector<16x128xf32>
    %44 = tpu.matmul %41, %0, %cst_29 {dimension_numbers = #tpu.dot_dimension_numbers<[1], [0], [0], [1], [0, 0, 1, 1], [], []>} : vector<16x128xf32>, vector<128x128xf32>, vector<16x128xf32> -> vector<16x128xf32>
    %45 = arith.subf %41, %44 : vector<16x128xf32>
    %46 = arith.mulf %45, %45 : vector<16x128xf32>
    %cst_30 = arith.constant dense<0.000000e+00> : vector<16x128xf32>
    %47 = tpu.matmul %46, %0, %cst_30 {dimension_numbers = #tpu.dot_dimension_numbers<[1], [0], [0], [1], [0, 0, 1, 1], [], []>} : vector<16x128xf32>, vector<128x128xf32>, vector<16x128xf32> -> vector<16x128xf32>
    %cst_31 = arith.constant 9.99999974E-6 : f32
    %48 = vector.broadcast %cst_31 : f32 to vector<16x128xf32>
    %49 = arith.addf %47, %48 : vector<16x128xf32>
    %50 = math.rsqrt %49 : vector<16x128xf32>
    %51 = arith.mulf %45, %50 : vector<16x128xf32>
    %52 = vector.broadcast %42 : vector<1x128xf32> to vector<16x128xf32>
    %53 = arith.mulf %51, %52 : vector<16x128xf32>
    %54 = vector.broadcast %43 : vector<1x128xf32> to vector<16x128xf32>
    %55 = arith.addf %53, %54 : vector<16x128xf32>
    %c0_32 = arith.constant 0 : index
    %c0_33 = arith.constant 0 : index
    %56 = vector.load %arg11[%c0_32, %c0_33] : memref<8x128xf32, #tpu.memory_space<vmem>>, vector<8x128xf32>
    %cst_34 = arith.constant dense<0.000000e+00> : vector<8x16xf32>
    %57 = tpu.matmul %56, %55, %cst_34 {dimension_numbers = #tpu.dot_dimension_numbers<[1], [1], [0], [0], [0, 0, 1, 0], [], []>} : vector<8x128xf32>, vector<16x128xf32>, vector<8x16xf32> -> vector<8x16xf32>
    %c0_35 = arith.constant 0 : index
    %c0_36 = arith.constant 0 : index
    %58 = vector.load %arg12[%c0_35, %c0_36] : memref<8x128xf32, #tpu.memory_space<vmem>>, vector<8x128xf32>
    %cst_37 = arith.constant dense<0.000000e+00> : vector<8x16xf32>
    %59 = tpu.matmul %58, %1, %cst_37 {dimension_numbers = #tpu.dot_dimension_numbers<[1], [1], [0], [0], [0, 0, 1, 0], [], []>} : vector<8x128xf32>, vector<16x128xf32>, vector<8x16xf32> -> vector<8x16xf32>
    %60 = arith.addf %57, %59 : vector<8x16xf32>
    %c0_38 = arith.constant 0 : index
    %c0_39 = arith.constant 0 : index
    %61 = vector.load %arg13[%c0_38, %c0_39] : memref<1x1xf32, #tpu.memory_space<vmem>>, vector<1x1xf32>
    %62 = vector.broadcast %61 : vector<1x1xf32> to vector<8x16xf32>
    %63 = arith.addf %60, %62 : vector<8x16xf32>
    %64 = vector.shape_cast %63 : vector<8x16xf32> to vector<1x8x16xf32>
    %c0_40 = arith.constant 0 : index
    %c0_41 = arith.constant 0 : index
    %c0_42 = arith.constant 0 : index
    %65 = vector.load %arg14[%c0_40, %c0_41, %c0_42] : memref<1x8x16xf32, #tpu.memory_space<vmem>>, vector<1x8x16xf32>
    tpu.vector_store %arg14[%c0_40, %c0_41, %c0_42], %64 {strides = array<i32>} : memref<1x8x16xf32, #tpu.memory_space<vmem>>, vector<1x8x16xf32>,
    return
  }
  func.func @transform_0(%arg0: i32) -> (i32, i32) {
    %c0_i32 = arith.constant 0 : i32
    %c0_i32_0 = arith.constant 0 : i32
    return %arg0, %c0_i32 : i32, i32
  }
  func.func @transform_1(%arg0: i32) -> (i32, i32) {
    %c0_i32 = arith.constant 0 : i32
    %c0_i32_0 = arith.constant 0 : i32
    %c0_i32_1 = arith.constant 0 : i32
    return %c0_i32, %c0_i32_0 : i32, i32
  }
  func.func @transform_2(%arg0: i32) -> (i32, i32) {
    %c0_i32 = arith.constant 0 : i32
    %c0_i32_0 = arith.constant 0 : i32
    %c0_i32_1 = arith.constant 0 : i32
    return %c0_i32, %c0_i32_0 : i32, i32
  }
  func.func @transform_3(%arg0: i32) -> (i32, i32) {
    %c0_i32 = arith.constant 0 : i32
    %c0_i32_0 = arith.constant 0 : i32
    %c0_i32_1 = arith.constant 0 : i32
    return %c0_i32, %c0_i32_0 : i32, i32
  }
  func.func @transform_4(%arg0: i32) -> (i32, i32) {
    %c0_i32 = arith.constant 0 : i32
    %c0_i32_0 = arith.constant 0 : i32
    %c0_i32_1 = arith.constant 0 : i32
    return %c0_i32, %c0_i32_0 : i32, i32
  }
  func.func @transform_5(%arg0: i32) -> (i32, i32) {
    %c0_i32 = arith.constant 0 : i32
    %c0_i32_0 = arith.constant 0 : i32
    %c0_i32_1 = arith.constant 0 : i32
    return %c0_i32, %c0_i32_0 : i32, i32
  }
  func.func @transform_6(%arg0: i32) -> (i32, i32) {
    %c0_i32 = arith.constant 0 : i32
    %c0_i32_0 = arith.constant 0 : i32
    %c0_i32_1 = arith.constant 0 : i32
    return %c0_i32, %c0_i32_0 : i32, i32
  }
  func.func @transform_7(%arg0: i32) -> (i32, i32) {
    %c0_i32 = arith.constant 0 : i32
    %c0_i32_0 = arith.constant 0 : i32
    %c0_i32_1 = arith.constant 0 : i32
    return %c0_i32, %c0_i32_0 : i32, i32
  }
  func.func @transform_8(%arg0: i32) -> (i32, i32) {
    %c0_i32 = arith.constant 0 : i32
    %c0_i32_0 = arith.constant 0 : i32
    %c0_i32_1 = arith.constant 0 : i32
    return %c0_i32, %c0_i32_0 : i32, i32
  }
  func.func @transform_9(%arg0: i32) -> (i32, i32) {
    %c0_i32 = arith.constant 0 : i32
    %c0_i32_0 = arith.constant 0 : i32
    %c0_i32_1 = arith.constant 0 : i32
    return %c0_i32, %c0_i32_0 : i32, i32
  }
  func.func @transform_10(%arg0: i32) -> (i32, i32) {
    %c0_i32 = arith.constant 0 : i32
    %c0_i32_0 = arith.constant 0 : i32
    %c0_i32_1 = arith.constant 0 : i32
    return %c0_i32, %c0_i32_0 : i32, i32
  }
  func.func @transform_11(%arg0: i32) -> (i32, i32) {
    %c0_i32 = arith.constant 0 : i32
    %c0_i32_0 = arith.constant 0 : i32
    %c0_i32_1 = arith.constant 0 : i32
    return %c0_i32, %c0_i32_0 : i32, i32
  }
  func.func @transform_12(%arg0: i32) -> (i32, i32) {
    %c0_i32 = arith.constant 0 : i32
    %c0_i32_0 = arith.constant 0 : i32
    %c0_i32_1 = arith.constant 0 : i32
    return %c0_i32, %c0_i32_0 : i32, i32
  }
  func.func @transform_13(%arg0: i32) -> (i32, i32, i32) {
    %c0_i32 = arith.constant 0 : i32
    %c0_i32_0 = arith.constant 0 : i32
    %c0_i32_1 = arith.constant 0 : i32
    return %arg0, %c0_i32, %c0_i32_0 : i32, i32, i32
  }
}

</mosaic_0001>

<bundles_post_ra>
// kernel: tpu_custom_call.1
= control target key start
LH: loop header
LB: loop body
LE: loop exit
PB: predicated region body
PF: predicated region fallthrough
CT: control target
= control target key end

     0   :  { %s2185_s0 = inlined_call_operand.hbm [shape: f32[32,128], index: 0, kind: input, shape index: {}]   ;;  %s2186_s1 = inlined_call_operand.hbm [shape: f32[128,128], index: 1, kind: input, shape index: {}]   ;;  %s2187_s2 = inlined_call_operand.vmem [shape: f32[1,128], index: 2, kind: input, shape index: {}]   ;;  %s2188_s3 = inlined_call_operand.vmem [shape: f32[1,128], index: 3, kind: input, shape index: {}]   ;;  %s2189_s4 = inlined_call_operand.vmem [shape: f32[1,128], index: 4, kind: input, shape index: {}]   ;;  %s2190_s5 = inlined_call_operand.hbm [shape: f32[128,128], index: 5, kind: input, shape index: {}]   ;;  %s2191_s6 = inlined_call_operand.hbm [shape: f32[1,128], index: 6, kind: input, shape index: {}]   ;;  %s2192_s7 = inlined_call_operand.hbm [shape: f32[1,128], index: 7, kind: input, shape index: {}]   ;;  %s2193_s8 = inlined_call_operand.hbm [shape: f32[1,128], index: 8, kind: input, shape index: {}]   ;;  %s2194_s9 = inlined_call_operand.hbm [shape: f32[128,128], index: 9, kind: input, shape index: {}]   ;;  %s2195_s10 = inlined_call_operand.vmem [shape: f32[8,128], index: 10, kind: input, shape index: {}]   ;;  %s2196_s11 = inlined_call_operand.hbm [shape: f32[8,128], index: 11, kind: input, shape index: {}]   ;;  %s2197_s12 = inlined_call_operand.<no memory space> [shape: f32[1,1], index: 12, kind: input, shape index: {}]   ;;  %s2198_s13 = inlined_call_operand.hbm [shape: f32[2,8,16], index: 13, kind: output, shape index: {}]  }
   0x1   :  { %2202 = sst [smem:[#allocation24_spill]] %s2186_s1  ;;  %v18_v0 = vstv %s2197_s12 }
   0x2   :  { %2203 = sst [smem:[#allocation25_spill]] %s2190_s5  ;;  %19 = vst [vmem:[#allocation2] sm:$0x1] %v18_v0 }
   0x3   :  { %2204 = sst [smem:[#allocation26_spill]] %s2191_s6 }
   0x4   :  { %2205 = sst [smem:[#allocation27_spill]] %s2193_s8 }
   0x5   :  { %2206 = sst [smem:[#allocation28_spill]] %s2195_s10 }
   0x6   :  { %2207 = sst [smem:[#allocation29_spill]] %s2198_s13 }
   0x7   :  { %20 = vsyncpa [#allocation4], 0 }
   0x8   :  { %22 = vsyncpa [#allocation4 + $0x1], 0 }
   0x9   :  { %23 = vsyncpa [#allocation7], 0 }
   0xa   :  { %24 = vsyncpa [#allocation10], 0 }
   0xb   :  { %25 = vsyncpa [#allocation13], 0 }
   0xc   :  { %26 = vsyncpa [#allocation16], 0 }
   0xd   :  { %27 = vsyncpa [#allocation5], 0 }
   0xe   :  { %29 = vsyncpa [#allocation5 + $0x1], 0  ;;  %s1808_s27 = smov 0   ;;  %s1810_s28 = smov 0  }
   0xf   :  { %s1812_s29 = smov 0   ;;  %s1814_s30 = smov 0  }
  0x10 LB: > { %s2208_s1 = sld [smem:[#allocation24_spill]]  ;;  %s1832_s16 = sadd.s32 4294967295, %s1723_s30   ;;  %s1723_s30 = sphi %s1814_s30, %s2226_s30   ;;  %s1719_s29 = sphi %s1812_s29, %s2225_s29   ;;  %s1715_s28 = sphi %s1810_s28, %s2224_s28   ;;  %s1711_s27 = sphi %s1808_s27, %s2223_s27  }
  0x11   : > { %p1226_p0 = scmp.ge.s32.totalorder %s1723_s30, 1  ;;  %p56_p1 = scmp.eq.s32.totalorder %s1832_s16, 0 }
  0x12   : > { %p344_p2 = scmp.lt.s32.totalorder %s1723_s30, 3  ;;  %s1725_s18 = smov [#allocation6]  }
  0x13   : > { %s357_s19 = sshll.u32 %s1725_s18, 4  ;;  %s2210_s6 = sld [smem:[#allocation26_spill]]  ;;  %s358_s19 = int_to_ptr.vmem [resolvable:$true] %s357_s19 }
  0x14   : > { %p1837_p3 = pnand %p1226_p0, %p344_p2  ;;  %s2212_s8 = sld [smem:[#allocation27_spill]] }
  0x15   : > { %s1726_s12 = smov [#allocation9]   ;;  %s2200_s18 = smov 128  }
  0x16   : > { %s355_s15 = sshll.u32 %s2208_s1, 4  ;;  %p1289_p4 = pneg %p1837_p3  ;;  %s356_s15 = int_to_ptr.hbm [resolvable:$true] %s355_s15 }
  0x17   : > { %s395_s14 = sshll.u32 %s1726_s12, 4  ;;  %s2201_s1 = smov 8   ;;  %s396_s14 = int_to_ptr.vmem [resolvable:$true] %s395_s14 }
  0x18   : > { %p1849_p6 = pnand %p1289_p4, %p56_p1  ;;  %s2213_s5 = sld [smem:[#allocation25_spill]] }
  0x19   : > { %s393_s22 = sshll.u32 %s2210_s6, 4  ;;  %s1729_s24 = smov [#allocation12]   ;;  %s394_s22 = int_to_ptr.hbm [resolvable:$true] %s393_s22 }
  0x1a   : > { %s417_s26 = sshll.u32 %s2212_s8, 4  ;;  %s419_s25 = sshll.u32 %s1729_s24, 4  ;;  %s418_s26 = int_to_ptr.hbm [resolvable:$true] %s417_s26  ;;  %s420_s25 = int_to_ptr.vmem [resolvable:$true] %s419_s25 }
  0x1b   : > { %1292 = dma.hbm_to_vmem [thread:$0]  (!%p1849_p6), %s356_s15, 2048, %s358_s19, [#allocation7], %s2200_s18, %s2200_s18, %s2201_s1  }
  0x1c   : > { %1298 = dma.hbm_to_vmem [thread:$0]  (!%p1849_p6), %s394_s22, 16, %s396_s14, [#allocation10]  }
  0x1d   : > { %1304 = dma.hbm_to_vmem [thread:$0]  (!%p1849_p6), %s418_s26, 16, %s420_s25, [#allocation13]  }
  0x1e   : > { %s378_s6 = sshll.u32 %s2213_s5, 4  ;;  %s1730_s12 = smov [#allocation8]   ;;  %s379_s6 = int_to_ptr.hbm [resolvable:$true] %s378_s6 }
  0x1f   : > { %s380_s8 = sshll.u32 %s1730_s12, 4  ;;  %s405_s15 = sshll.u32 %s2192_s7, 4  ;;  %s381_s8 = int_to_ptr.vmem [resolvable:$true] %s380_s8  ;;  %s406_s15 = int_to_ptr.hbm [resolvable:$true] %s405_s15 }
  0x20   : > { %1295 = dma.hbm_to_vmem [thread:$0]  (!%p1849_p6), %s379_s6, 2048, %s381_s8, [#allocation7], %s2200_s18, %s2200_s18, %s2201_s1  }
  0x21   : > { %s428_s14 = sshll.u32 %s2194_s9, 4  ;;  %s1731_s26 = smov [#allocation11]   ;;  %s429_s14 = int_to_ptr.hbm [resolvable:$true] %s428_s14 }
  0x22   : > { %s407_s20 = sshll.u32 %s1731_s26, 4  ;;  %s1732_s10 = smov [#allocation14]   ;;  %s408_s20 = int_to_ptr.vmem [resolvable:$true] %s407_s20 }
  0x23   : > { %1301 = dma.hbm_to_vmem [thread:$0]  (!%p1849_p6), %s406_s15, 16, %s408_s20, [#allocation10]  }
  0x24   : > { %s430_s6 = sshll.u32 %s1732_s10, 4  ;;  %s446_s21 = sshll.u32 %s2196_s11, 4  ;;  %s431_s6 = int_to_ptr.vmem [resolvable:$true] %s430_s6  ;;  %s447_s21 = int_to_ptr.hbm [resolvable:$true] %s446_s21 }
  0x25   : > { %1307 = dma.hbm_to_vmem [thread:$0]  (!%p1849_p6), %s429_s14, 2048, %s431_s6, [#allocation13], %s2200_s18, %s2200_s18, %s2201_s1  }
  0x26   : > { %s1733_s24 = smov [#allocation15]   ;;  %s1225_s12 = sadd.s32 4294967294, %s1723_s30  }
  0x27   : > { %s448_s25 = sshll.u32 %s1733_s24, 4  ;;  %s1893_s15 = sadd.s32 1, %s1723_s30   ;;  %s449_s25 = int_to_ptr.vmem [resolvable:$true] %s448_s25 }
  0x28   : > { %1310 = dma.hbm_to_vmem [thread:$0]  (!%p1849_p6), %s447_s21, 128, %s449_s25, [#allocation16]  }
  0x29   : > { %s42_s19 = sadd.s32 1, %s1719_s29  ;;  %s39_s22 = ssub.s32 %s1723_s30, %s1893_s15 }
  0x2a   : > { %p49_p7 = scmp.ne.s32.totalorder %s1719_s29, %s1715_s28  ;;  %p40_p8 = scmp.eq.s32.totalorder %s39_s22, 0 }
  0x2b   : > { %p50_p9 = scmp.eq.s32.totalorder %s1723_s30, 0  ;;  %p55_p10 = scmp.ne.s32.totalorder %s1715_s28, %s1711_s27 }
  0x2c   : > { %p331_p11 = scmp.eq.s32.totalorder %s1832_s16, 1  ;;  %p337_p0 = scmp.eq.s32.totalorder %s1225_s12, 1 }
  0x2d   : > { %s1905_s14 = scalar_select %p40_p8, %s1719_s29, %s42_s19  }
  0x2e   : > { %p1909_p12 = por %p56_p1, %p55_p10  ;;  %p1913_p13 = por %p331_p11, %p49_p7 }
  0x2f   : > { %p51_p2 = por %p50_p9, %p49_p7  ;;  %s462_s20 = sand.u32 1, %s1719_s29  }
  0x30   : > { %p1918_p4 = por %p337_p0, %p55_p10  ;;  %p1326_p6 = scmp.lt.s32.totalorder %s1723_s30, 2 }
  0x31   : > { %s1235_s6 = sshll.u32 %s462_s20, 4  ;;  %s1256_s8 = sshll.u32 %s1723_s30, 4 }
  0x32   : > { %s471_s24 = scalar_lea.hbm %s2185_s0, %s1256_s8  ;;  %s466_s19 = scalar_lea.vmem [#allocation3], %s1235_s6 }
  0x33   : > { %s472_s25 = sshll.u32 %s471_s24, 4  ;;  %s474_s22 = sshll.u32 %s466_s19, 4  ;;  %s473_s25 = int_to_ptr.hbm [resolvable:$true] %s472_s25  ;;  %s475_s22 = int_to_ptr.vmem [resolvable:$true] %s474_s22 }
  0x34   : > { %p1927_p8 = pnand %p1326_p6, %p51_p2  ;;  %s463_s18 = scalar_lea.sflag [#allocation4], %s462_s20 }
  0x35   : > { %s1611_s1 = sshra.s32 %s473_s25, 4  ;;  %s1618_s6 = scalar_lea.hbm %s2185_s0, 32  ;;  %s1612_s1 = int_to_ptr.hbm [resolvable:$true] %s1611_s1 }
  0x36   : > { %s1613_s5 = scalar_lea.hbm %s1612_s1, 16  ;;  %p1615_p9 = pneg %p1927_p8 }
  0x37   : > { %p1614_p7 = scmp.ne.s32.totalorder %s1612_s1, %s1613_s5  ;;  %p1619_p0 = scmp.lt.s32.totalorder %s1612_s1, %s2185_s0 }
  0x38   : > { %p1620_p2 = scmp.lt.s32.totalorder %s1618_s6, %s1613_s5 }
  0x39   : > { %p1616_p10 = pnand %p1615_p9, %p1614_p7 }
  0x3a   : > { %p1621_p6 = por %p1620_p2, %p1619_p0 }
  0x3b   : > { %p1617_p11 = pneg %p1616_p10 }
  0x3d   : > { %p1622_p5 = pnand %p1621_p6, %p1617_p11 }
  0x3f   : > { %1625 = shalt.err (!%p1622_p5)
}
  0x40   : > { %s2218_s20 = smov 8   ;;  %s2219_s19 = smov 128  }
  0x41   : > { %1314 = dma.hbm_to_vmem [thread:$0]  (!%p1927_p8), %s473_s25, 256, %s475_s22, %s463_s18, %s2219_s19, %s2219_s19, %s2218_s20  }
  0x42   : > { %486 = sbr.rel (%p1837_p3) target bundleno = 1200 (0x4b0), region = 72  ;;  %s1947_s8 = sand.u32 (!%p1837_p3), 1, %s1715_s28  }
  0x43   : > { %s1239_s1 = sshll.u32 (!%p1837_p3), %s1947_s8, 4  ;;  %s489_s5 = scalar_lea.sflag (!%p1837_p3), [#allocation4], %s1947_s8 }
  0x44   : > { %s1951_s13 = scalar_lea.vmem (!%p1837_p3), [#allocation3], %s1239_s1 }
  0x47   : > { %1686 = dma.done.wait (%p1909_p12), %s489_s5, 256  }
  0x48   : > { %1688 = vsyncadd (%p1909_p12), %s489_s5, 4294967040 }
  0x49   : > { %1690 = dma.done.wait (%p56_p1), [#allocation7], 4096  }
  0x4a   : > { %1692 = vsyncadd (%p56_p1), [#allocation7], 4294963200 }
  0x4b   : > { %1694 = dma.done.wait (%p56_p1), [#allocation10], 32  }
  0x4c   : > { %1696 = vsyncadd (%p56_p1), [#allocation10], 4294967264 }
  0x4d   : > { %1698 = dma.done.wait (%p56_p1), [#allocation13], 2064  }
  0x4e   : > { %1700 = vsyncadd (%p56_p1), [#allocation13], 4294965232 }
  0x4f   : > { %1702 = dma.done.wait (%p56_p1), [#allocation16], 128  }
  0x50   : > { %1704 = vsyncadd (%p56_p1), [#allocation16], 4294967168  ;;  %v605_v1 = vld [vmem:[#allocation6 + $0x78] sm:$0xff]  ;;  %v604_v2 = vld [vmem:[#allocation6 + $0x70] sm:$0xff]  ;;  %s2220_s24 = sld [smem:[#allocation28_spill]]  ;;  %s1247_s20 = sshll.u32 %s1947_s8, 3 }
  0x51   : > { %610 = vmatpush.msra.mxu0 %v605_v1  ;;  %v603_v3 = vld [vmem:[#allocation6 + $0x68] sm:$0xff]  ;;  %v602_v4 = vld [vmem:[#allocation6 + $0x60] sm:$0xff]  ;;  %v601_v5 = vld [vmem:[#allocation6 + $0x58] sm:$0xff]  ;;  %s1253_s19 = sshll.u32 %s1832_s16, 3  ;;  %s570_s18 = scalar_lea.vmem [#allocation17], %s1247_s20 }
  0x52   : > { %v600_v6 = vld [vmem:[#allocation6 + $0x50] sm:$0xff]  ;;  %v599_v7 = vld [vmem:[#allocation6 + $0x48] sm:$0xff]  ;;  %v598_v8 = vld [vmem:[#allocation6 + $0x40] sm:$0xff]  ;;  %s1085_s23 = sshll.u32 %s570_s18, 4  ;;  %s1073_s22 = scalar_lea.sflag [#allocation5], %s1947_s8  ;;  %s1086_s23 = int_to_ptr.vmem [resolvable:$true] %s1085_s23 }
  0x53   : > { %611 = vmatpush.msra.mxu0 %v604_v2  ;;  %v597_v9 = vld [vmem:[#allocation6 + $0x38] sm:$0xff]  ;;  %v596_v10 = vld [vmem:[#allocation6 + $0x30] sm:$0xff]  ;;  %v595_v11 = vld [vmem:[#allocation6 + $0x28] sm:$0xff] }
  0x54   : > { %v594_v12 = vld [vmem:[#allocation6 + $0x20] sm:$0xff]  ;;  %v593_v13 = vld [vmem:[#allocation6 + $0x18] sm:$0xff]  ;;  %v592_v14 = vld [vmem:[#allocation6 + $0x10] sm:$0xff] }
  0x55   : > { %612 = vmatpush.msra.mxu0 %v603_v3  ;;  %v591_v15 = vld [vmem:[#allocation6 + $0x8] sm:$0xff]  ;;  %v590_v16 = vld [vmem:[#allocation6] sm:$0xff]  ;;  %v1985_v20 = vld [vmem:[#allocation14 + $0x70] sm:$0xff] }
  0x56   : > { %v1974_v17 = vld [vmem:[%s1951_s13] sm:$0xff]  ;;  %v1978_v18 = vld [vmem:[%s1951_s13 + $0x8] sm:$0xff]  ;;  %s2221_s13 = sld [smem:[#allocation29_spill]] }
  0x57   : > { %613 = vmatpush.msra.mxu0 %v602_v4  ;;  %v1981_v19 = vld [vmem:[#allocation14 + $0x78] sm:$0xff]  ;;  %v1990_v21 = vld [vmem:[#allocation14 + $0x68] sm:$0xff]  ;;  %v1995_v22 = vld [vmem:[#allocation14 + $0x60] sm:$0xff] }
  0x58   : > { %723 = vmatpush.msra.mxu1 %v1981_v19  ;;  %750 = vmatpush.msra.mxu2 %v1981_v19  ;;  %v1378_v23 = vld [vmem:[%s2187_s2] ss:$0 sm:$0xff]  ;;  %v2008_v26 = vld [vmem:[#allocation14 + $0x50] sm:$0xff]  ;;  %v2015_v28 = vld [vmem:[#allocation14 + $0x48] sm:$0xff] }
  0x59   : > { %614 = vmatpush.msra.mxu0 %v601_v5  ;;  %v2003_v24 = vld [vmem:[#allocation14 + $0x58] sm:$0xff]  ;;  %v2023_v30 = vld [vmem:[#allocation14 + $0x40] sm:$0xff]  ;;  %v2032_v33 = vld [vmem:[#allocation14 + $0x30] sm:$0xff] }
  0x5a   : > { %724 = vmatpush.msra.mxu1 %v1985_v20  ;;  %751 = vmatpush.msra.mxu2 %v1985_v20  ;;  %v2029_v32 = vld [vmem:[#allocation14 + $0x38] sm:$0xff]  ;;  %v2039_v36 = vld [vmem:[#allocation14 + $0x28] sm:$0xff]  ;;  %v2048_v40 = vld [vmem:[#allocation14 + $0x20] sm:$0xff] }
  0x5b   : > { %615 = vmatpush.msra.mxu0 %v600_v6  ;;  %v2056_v43 = vld [vmem:[#allocation14 + $0x18] sm:$0xff]  ;;  %v2064_v47 = vld [vmem:[#allocation14 + $0x10] sm:$0xff]  ;;  %v2072_v50 = vld [vmem:[#allocation14 + $0x8] sm:$0xff] }
  0x5c   : > { %725 = vmatpush.msra.mxu1 %v1990_v21  ;;  %752 = vmatpush.msra.mxu2 %v1990_v21  ;;  %v2079_v55 = vld [vmem:[#allocation14] sm:$0xff]  ;;  %s1083_s17 = scalar_lea.hbm %s2221_s13, %s1253_s19 }
  0x5d   : > { %616 = vmatpush.msra.mxu0 %v599_v7  ;;  %s1087_s25 = sshll.u32 %s1083_s17, 4  ;;  %s1088_s25 = int_to_ptr.hbm [resolvable:$true] %s1087_s25 }
  0x5e   : > { %726 = vmatpush.msra.mxu1 %v1995_v22  ;;  %753 = vmatpush.msra.mxu2 %v1995_v22  ;;  %s1655_s12 = sshra.s32 %s1088_s25, 4  ;;  %s1656_s12 = int_to_ptr.hbm [resolvable:$true] %s1655_s12 }
  0x5f   : > { %617 = vmatpush.msra.mxu0 %v598_v8  ;;  %s1657_s16 = scalar_lea.hbm %s1656_s12, 8  ;;  %p1662_p12 = scmp.lt.s32.totalorder %s1656_s12, %s2221_s13 }
  0x60   : > { %727 = vmatpush.msra.mxu1 %v2003_v24  ;;  %754 = vmatpush.msra.mxu2 %v2003_v24  ;;  %p1658_p1 = scmp.ne.s32.totalorder %s1656_s12, %s1657_s16 }
  0x61   : > { %618 = vmatpush.msra.mxu0 %v597_v9 }
  0x62   : > { %728 = vmatpush.msra.mxu1 %v2008_v26  ;;  %755 = vmatpush.msra.mxu2 %v2008_v26  ;;  %p1659_p3 = pnand %p1658_p1, %p1913_p13 }
  0x63   : > { %619 = vmatpush.msra.mxu0 %v596_v10 }
  0x64   : > { %729 = vmatpush.msra.mxu1 %v2015_v28  ;;  %756 = vmatpush.msra.mxu2 %v2015_v28  ;;  %p1660_p5 = pneg %p1659_p3 }
  0x65   : > { %620 = vmatpush.msra.mxu0 %v595_v11 }
  0x66   : > { %730 = vmatpush.msra.mxu1 %v2023_v30  ;;  %757 = vmatpush.msra.mxu2 %v2023_v30 }
  0x67   : > { %621 = vmatpush.msra.mxu0 %v594_v12 }
  0x68   : > { %731 = vmatpush.msra.mxu1 %v2029_v32  ;;  %758 = vmatpush.msra.mxu2 %v2029_v32 }
  0x69   : > { %622 = vmatpush.msra.mxu0 %v593_v13 }
  0x6a   : > { %732 = vmatpush.msra.mxu1 %v2032_v33  ;;  %759 = vmatpush.msra.mxu2 %v2032_v33 }
  0x6b   : > { %623 = vmatpush.msra.mxu0 %v592_v14 }
  0x6c   : > { %733 = vmatpush.msra.mxu1 %v2039_v36  ;;  %760 = vmatpush.msra.mxu2 %v2039_v36 }
  0x6d   : > { %624 = vmatpush.msra.mxu0 %v591_v15 }
  0x6e   : > { %734 = vmatpush.msra.mxu1 %v2048_v40  ;;  %761 = vmatpush.msra.mxu2 %v2048_v40 }
  0x6f   : > { %625 = vmatpush.msra.mxu0 %v590_v16 }
  0x70   : > { %626 = vmatmul.f32.vlgmr.msra.gmra.mxu0 %v1974_v17  ;;  %735 = vmatpush.msra.mxu1 %v2056_v43 }
  0x71   : > { %938 = vmatpush.msrb.mxu0 %v1981_v19  ;;  %762 = vmatpush.msra.mxu2 %v2056_v43 }
  0x72   : > { %736 = vmatpush.msra.mxu1 %v2064_v47 }
  0x73   : > { %939 = vmatpush.msrb.mxu0 %v1985_v20  ;;  %763 = vmatpush.msra.mxu2 %v2064_v47 }
  0x74   : > { %737 = vmatpush.msra.mxu1 %v2072_v50 }
  0x75   : > { %940 = vmatpush.msrb.mxu0 %v1990_v21  ;;  %764 = vmatpush.msra.mxu2 %v2072_v50 }
  0x76   : > { %738 = vmatpush.msra.mxu1 %v2079_v55 }
  0x77   : > { %941 = vmatpush.msrb.mxu0 %v1995_v22  ;;  %765 = vmatpush.msra.mxu2 %v2079_v55 }
  0x78   : > { %629 = vmatmul.f32.gmra.mxu0 %v1978_v18  ;;  %965 = vmatpush.msrb.mxu1 %v1981_v19 }
  0x79   : > { %942 = vmatpush.msrb.mxu0 %v2003_v24  ;;  %1036 = vmatpush.xpose.msrb.mxu2 %v1978_v18 }
  0x7a   : > { %966 = vmatpush.msrb.mxu1 %v1985_v20 }
  0x7b   : > { %943 = vmatpush.msrb.mxu0 %v2008_v26 }
  0x7c   : > { %967 = vmatpush.msrb.mxu1 %v1990_v21 }
  0x7d   : > { %944 = vmatpush.msrb.mxu0 %v2015_v28  ;;  %1037 = vmatpush.xpose.msrb.mxu2 %v1974_v17 }
  0x7e   : > { %968 = vmatpush.msrb.mxu1 %v1995_v22 }
  0x7f   : > { %945 = vmatpush.msrb.mxu0 %v2023_v30 }
  0x80   : > { %969 = vmatpush.msrb.mxu1 %v2003_v24 }
  0x81   : > { %946 = vmatpush.msrb.mxu0 %v2029_v32 }
  0x82   : > { %970 = vmatpush.msrb.mxu1 %v2008_v26 }
  0x83   : > { %947 = vmatpush.msrb.mxu0 %v2032_v33 }
  0x84   : > { %971 = vmatpush.msrb.mxu1 %v2015_v28 }
  0x85   : > { %948 = vmatpush.msrb.mxu0 %v2039_v36 }
  0x86   : > { %972 = vmatpush.msrb.mxu1 %v2023_v30 }
  0x87   : > { %949 = vmatpush.msrb.mxu0 %v2048_v40 }
  0x88   : > { %973 = vmatpush.msrb.mxu1 %v2029_v32 }
  0x89   : > { %950 = vmatpush.msrb.mxu0 %v2056_v43 }
  0x8a   : > { %974 = vmatpush.msrb.mxu1 %v2032_v33 }
  0x8b   : > { %951 = vmatpush.msrb.mxu0 %v2064_v47 }
  0x8c   : > { %975 = vmatpush.msrb.mxu1 %v2039_v36 }
  0x8d   : > { %952 = vmatpush.msrb.mxu0 %v2072_v50 }
  0x8e   : > { %976 = vmatpush.msrb.mxu1 %v2048_v40 }
  0x8f   : > { %953 = vmatpush.msrb.mxu0 %v2079_v55 }
  0x90   : > { %977 = vmatpush.msrb.mxu1 %v2056_v43 }
  0x92   : > { %978 = vmatpush.msrb.mxu1 %v2064_v47 }
  0x94   : > { %979 = vmatpush.msrb.mxu1 %v2072_v50 }
  0x96   : > { %980 = vmatpush.msrb.mxu1 %v2079_v55 }
  0xed   : > { %v627_v25 = vpop.f32.mrf.mxu0 }
  0xee   : > { %v2011_v27 = vadd.f32 %v1378_v23, %v627_v25 }
  0xf0   : > { %v2019_v29 = vmul.f32 0.70710677, %v2011_v27 }
  0xf2   : > { %v637_v31 = vmul.f32 %v2019_v29, %v2019_v29 }
  0xf4   : > { %v2035_v34 = vmin.f32 %v637_v31, 16.0 }
  0xf5   : > { %v630_v35 = vpop.f32.mrf.mxu0 }
  0xf6   : > { %v639_v37 = vmul.f32 2.1237322e-06, %v2035_v34  ;;  %v2043_v38 = vadd.f32 %v1378_v23, %v630_v35  ;;  %v650_v39 = vmul.f32 3.8918573e-05, %v2035_v34 }
  0xf8   : > { %v640_v41 = vadd.f32 0.00028619796, %v639_v37  ;;  %v2052_v42 = vmul.f32 0.70710677, %v2043_v38  ;;  %v651_v44 = vadd.f32 0.001143296, %v650_v39 }
  0xfa   : > { %v641_v45 = vmul.f32 %v640_v41, %v2035_v34  ;;  %v677_v46 = vmul.f32 %v2052_v42, %v2052_v42  ;;  %v652_v48 = vmul.f32 %v651_v44, %v2035_v34 }
  0xfc   : > { %v2068_v49 = vmin.f32 %v677_v46, 16.0  ;;  %v653_v51 = vadd.f32 0.014752088, %v652_v48  ;;  %v642_v52 = vadd.f32 0.0036580483, %v641_v45 }
  0xfe   : > { %v679_v53 = vmul.f32 2.1237322e-06, %v2068_v49  ;;  %v690_v54 = vmul.f32 3.8918573e-05, %v2068_v49  ;;  %v654_v56 = vmul.f32 %v653_v51, %v2035_v34  ;;  %v643_v60 = vmul.f32 %v642_v52, %v2035_v34 }
 0x100   : > { %v680_v57 = vadd.f32 0.00028619796, %v679_v53  ;;  %v691_v58 = vadd.f32 0.001143296, %v690_v54  ;;  %v655_v59 = vadd.f32 0.112945676, %v654_v56 }
 0x101   : > { %v644_v3 = vadd.f32 0.05243302, %v643_v60  ;;  %v634_v56 = vmul.f32 0.5, %v2043_v38  ;;  %v817_v38 = vld [vmem:[#allocation8 + $0x60] sm:$0xff] }
 0x102   : > { %v681_v61 = vmul.f32 %v680_v57, %v2068_v49  ;;  %v692_v62 = vmul.f32 %v691_v58, %v2068_v49  ;;  %v656_v63 = vmul.f32 %v655_v59, %v2035_v34  ;;  %v819_v58 = vld [vmem:[#allocation8 + $0x70] sm:$0xff] }
 0x103   : > { %v645_v9 = vmul.f32 %v644_v3, %v2035_v34  ;;  %v813_v3 = vld [vmem:[#allocation8 + $0x40] sm:$0xff] }
 0x104   : > { %v693_v0 = vadd.f32 0.014752088, %v692_v62  ;;  %v682_v1 = vadd.f32 0.0036580483, %v681_v61  ;;  %v657_v2 = vadd.f32 0.4994258, %v656_v63 }
 0x105   : > { %v646_v13 = vadd.f32 0.18741608, %v645_v9  ;;  %v818_v63 = vld [vmem:[#allocation8 + $0x68] sm:$0xff]  ;;  %v807_v9 = vld [vmem:[#allocation8 + $0x10] sm:$0xff] }
 0x106   : > { %v694_v4 = vmul.f32 %v693_v0, %v2068_v49  ;;  %v658_v5 = vmul.f32 %v657_v2, %v2035_v34  ;;  %v683_v7 = vmul.f32 %v682_v1, %v2068_v49  ;;  %v816_v0 = vld [vmem:[#allocation8 + $0x58] sm:$0xff]  ;;  %v815_v1 = vld [vmem:[#allocation8 + $0x50] sm:$0xff]  ;;  %v814_v2 = vld [vmem:[#allocation8 + $0x48] sm:$0xff] }
 0x107   : > { %v647_v18 = vmul.f32 %v646_v13, %v2035_v34 }
 0x108   : > { %v695_v6 = vadd.f32 0.112945676, %v694_v4  ;;  %v659_v8 = vadd.f32 1.0, %v658_v5  ;;  %v684_v12 = vadd.f32 0.05243302, %v683_v7  ;;  %v812_v4 = vld [vmem:[#allocation8 + $0x38] sm:$0xff] }
 0x109   : > { %v648_v23 = vadd.f32 1.1283791, %v647_v18  ;;  %v811_v5 = vld [vmem:[#allocation8 + $0x30] sm:$0xff]  ;;  %v809_v7 = vld [vmem:[#allocation8 + $0x20] sm:$0xff] }
 0x10a   : > { %v696_v10 = vmul.f32 %v695_v6, %v2068_v49  ;;  %1385 = vrcp.f32 %v659_v8  ;;  %v685_v17 = vmul.f32 %v684_v12, %v2068_v49  ;;  %v671_v22 = vand.u32 2147483648, %v659_v8  ;;  %v810_v6 = vld [vmem:[#allocation8 + $0x28] sm:$0xff] }
 0x10b   : > { %v669_v25 = vand.u32 2147483647, %v659_v8  ;;  %vm665_vm1 = vweird.f32 %v659_v8  ;;  %v649_v32 = vmul.f32 %v648_v23, %v2019_v29  ;;  %v633_v29 = vmul.f32 0.5, %v2011_v27  ;;  %v820_v27 = vld [vmem:[#allocation8 + $0x78] sm:$0xff] }
 0x10c   : > { %v697_v11 = vadd.f32 0.4994258, %v696_v10  ;;  %v686_v21 = vadd.f32 0.18741608, %v685_v17  ;;  %v672_v31 = vor.u32 1.1754944e-38, %v671_v22  ;;  %825 = vmatpush.msra.mxu3 %v820_v27  ;;  %v806_v10 = vld [vmem:[#allocation8 + $0x8] sm:$0xff] }
 0x10d   : > { %vm670_vm3 = vcmp.eq.f32.partialorder %v669_v25, 8.507059e+37 }
 0x10e   : > { %v698_v14 = vmul.f32 %v697_v11, %v2068_v49  ;;  %v687_v30 = vmul.f32 %v686_v21, %v2068_v49  ;;  %826 = vmatpush.msra.mxu3 %v819_v58  ;;  %v805_v11 = vld [vmem:[#allocation8] sm:$0xff] }
 0x110   : > { %v699_v15 = vadd.f32 1.0, %v698_v14  ;;  %v1386_v16 = vpop.eup %1385  ;;  %v688_v41 = vadd.f32 1.1283791, %v687_v30  ;;  %827 = vmatpush.msra.mxu3 %v818_v63  ;;  %v1380_v30 = vld [vmem:[%s2189_s4] ss:$0 sm:$0xff] }
 0x111   : > { %v661_v19 = vmul.f32 %v1386_v16, %v659_v8  ;;  %vm666_vm0 = vweird.f32 %v1386_v16  ;;  %v808_v8 = vld [vmem:[#allocation8 + $0x18] sm:$0xff] }
 0x112   : > { %1387 = vrcp.f32 %v699_v15  ;;  %vm667_vm2 = vmor %vm665_vm1, %vm666_vm0  ;;  %v711_v36 = vand.u32 2147483648, %v699_v15  ;;  %v709_v45 = vand.u32 2147483647, %v699_v15  ;;  %vm705_vm5 = vweird.f32 %v699_v15  ;;  %828 = vmatpush.msra.mxu3 %v817_v38 }
 0x113   : > { %v662_v20 = vsub.f32 1.0, %v661_v19  ;;  %v689_v43 = vmul.f32 %v688_v41, %v2052_v42 }
 0x114   : > { %v712_v49 = vor.u32 1.1754944e-38, %v711_v36  ;;  %vm710_vm7 = vcmp.eq.f32.partialorder %v709_v45, 8.507059e+37  ;;  %829 = vmatpush.msra.mxu3 %v816_v0 }
 0x115   : > { %v663_v24 = vmul.f32 %v1386_v16, %v662_v20 }
 0x116   : > { %830 = vmatpush.msra.mxu3 %v815_v1 }
 0x117   : > { %v664_v28 = vadd.f32 %v1386_v16, %v663_v24  ;;  %v1379_v24 = vld [vmem:[%s2188_s3] ss:$0 sm:$0xff] }
 0x118   : > { %v1388_v26 = vpop.eup %1387  ;;  %831 = vmatpush.msra.mxu3 %v814_v2 }
 0x119   : > { %v701_v34 = vmul.f32 %v1388_v26, %v699_v15  ;;  %v668_v35 = vsel %vm667_vm2, %v1386_v16, %v664_v28  ;;  %vm706_vm4 = vweird.f32 %v1388_v26 }
 0x11a   : > { %v673_v33 = vsel %vm670_vm3, %v672_v31, %v668_v35  ;;  %vm707_vm6 = vmor %vm705_vm5, %vm706_vm4  ;;  %832 = vmatpush.msra.mxu3 %v813_v3 }
 0x11b   : > { %v702_v37 = vsub.f32 1.0, %v701_v34  ;;  %v674_v39 = vmul.f32 %v673_v33, %v649_v32 }
 0x11c   : > { %833 = vmatpush.msra.mxu3 %v812_v4 }
 0x11d   : > { %v703_v44 = vmul.f32 %v1388_v26, %v702_v37  ;;  %v1248_v46 = vclamps-f32 %v674_v39, 1.0 }
 0x11e   : > { %834 = vmatpush.msra.mxu3 %v811_v5 }
 0x11f   : > { %v704_v48 = vadd.f32 %v1388_v26, %v703_v44  ;;  %v717_v40 = vadd.f32 1.0, %v1248_v46  ;;  %v1381_v44 = vld [vmem:[#allocation9] ss:$0 sm:$0xff] }
 0x120   : > { %835 = vmatpush.msra.mxu3 %v810_v6 }
 0x121   : > { %v708_v51 = vsel %vm707_vm6, %v1388_v26, %v704_v48  ;;  %v719_v52 = vmul.f32 %v717_v40, %v633_v29 }
 0x122   : > { %v713_v53 = vsel %vm710_vm7, %v712_v49, %v708_v51  ;;  %836 = vmatpush.msra.mxu3 %v809_v7 }
 0x123   : > { %v714_v54 = vmul.f32 %v713_v53, %v689_v43  ;;  %739 = vmatmul.f32.vlgmr.msra.gmra.mxu1 %v719_v52 }
 0x124   : > { %837 = vmatpush.msra.mxu3 %v808_v8 }
 0x125   : > { %v1249_v47 = vclamps-f32 %v714_v54, 1.0 }
 0x126   : > { %838 = vmatpush.msra.mxu3 %v807_v9 }
 0x127   : > { %v718_v57 = vadd.f32 1.0, %v1249_v47 }
 0x128   : > { %839 = vmatpush.msra.mxu3 %v806_v10 }
 0x129   : > { %v720_v50 = vmul.f32 %v718_v57, %v634_v56 }
 0x12a   : > { %840 = vmatpush.msra.mxu3 %v805_v11 }
 0x12b   : > { %742 = vmatmul.f32.gmra.mxu1 %v720_v50 }
 0x1a0   : > { %v740_v59 = vpop.f32.mrf.mxu1 }
 0x1a1   : > { %v746_v42 = vsub.f32 %v719_v52, %v740_v59 }
 0x1a3   : > { %v748_v60 = vmul.f32 %v746_v42, %v746_v42 }
 0x1a5   : > { %766 = vmatmul.f32.vlgmr.msra.gmra.mxu2 %v748_v60 }
 0x1a8   : > { %v743_v61 = vpop.f32.mrf.mxu1 }
 0x1a9   : > { %v2124_v55 = vsub.f32 %v720_v50, %v743_v61 }
 0x1ab   : > { %v749_v62 = vmul.f32 %v2124_v55, %v2124_v55 }
 0x1ad   : > { %769 = vmatmul.f32.gmra.mxu2 %v749_v62 }
 0x228   : > { %v767_v12 = vpop.f32.mrf.mxu2 }
 0x229   : > { %v768_v13 = vadd.f32 1e-05, %v767_v12 }
 0x22b   : > { %1389 = vrsqrt.f32 %v768_v13  ;;  %vm779_vm9 = vweird.f32 %v768_v13 }
 0x230   : > { %v770_v14 = vpop.f32.mrf.mxu2 }
 0x231   : > { %v1390_v15 = vpop.eup %1389  ;;  %v771_v16 = vadd.f32 1e-05, %v770_v14 }
 0x232   : > { %v774_v17 = vmul.f32 %v1390_v15, %v768_v13  ;;  %vm780_vm8 = vweird.f32 %v1390_v15 }
 0x233   : > { %1391 = vrsqrt.f32 %v771_v16  ;;  %vm781_vm10 = vmor %vm779_vm9, %vm780_vm8  ;;  %vm789_vm12 = vweird.f32 %v771_v16 }
 0x234   : > { %v775_v18 = vmul.f32 %v1390_v15, %v774_v17 }
 0x236   : > { %v776_v19 = vmul.f32 0.5, %v775_v18 }
 0x238   : > { %v777_v20 = vsub.f32 1.5, %v776_v19 }
 0x239   : > { %v1392_v21 = vpop.eup %1391 }
 0x23a   : > { %v778_v22 = vmul.f32 %v1390_v15, %v777_v20  ;;  %v784_v23 = vmul.f32 %v1392_v21, %v771_v16  ;;  %vm790_vm11 = vweird.f32 %v1392_v21 }
 0x23b   : > { %vm791_vm13 = vmor %vm789_vm12, %vm790_vm11  ;;  %vm1070_vm12 = vcmask 130048  }
 0x23c   : > { %v785_v25 = vmul.f32 %v1392_v21, %v784_v23  ;;  %v782_v26 = vsel %vm781_vm10, %v1390_v15, %v778_v22 }
 0x23d   : > { %v793_v28 = vmul.f32 %v782_v26, %v746_v42 }
 0x23e   : > { %v786_v31 = vmul.f32 0.5, %v785_v25 }
 0x23f   : > { %v798_v34 = vmul.f32 %v1379_v24, %v793_v28 }
 0x240   : > { %v787_v32 = vsub.f32 1.5, %v786_v31 }
 0x241   : > { %v803_v35 = vadd.f32 %v1380_v30, %v798_v34 }
 0x242   : > { %v788_v33 = vmul.f32 %v1392_v21, %v787_v32 }
 0x243   : > { %841 = vmatmul.f32.vlgmr.msra.gmra.mxu3 %v803_v35 }
 0x244   : > { %v792_v37 = vsel %vm791_vm13, %v1392_v21, %v788_v33 }
 0x245   : > { %v794_v39 = vmul.f32 %v792_v37, %v2124_v55 }
 0x247   : > { %v799_v36 = vmul.f32 %v1379_v24, %v794_v39 }
 0x249   : > { %v804_v41 = vadd.f32 %v1380_v30, %v799_v36 }
 0x24b   : > { %844 = vmatmul.f32.gmra.mxu3 %v804_v41 }
 0x2c6   : > { %v842_v45 = vpop.f32.mrf.mxu3 }
 0x2c7   : > { %v2135_v46 = vadd.f32 %v1381_v44, %v842_v45 }
 0x2c9   : > { %v850_v48 = vmul.f32 0.70710677, %v2135_v46 }
 0x2cb   : > { %v852_v29 = vmul.f32 %v850_v48, %v850_v48 }
 0x2cd   : > { %v853_v40 = vmin.f32 %v852_v29, 16.0 }
 0x2ce   : > { %v845_v49 = vpop.f32.mrf.mxu3 }
 0x2cf   : > { %v854_v43 = vmul.f32 2.1237322e-06, %v853_v40  ;;  %v865_v51 = vmul.f32 3.8918573e-05, %v853_v40  ;;  %v2138_v52 = vadd.f32 %v1381_v44, %v845_v49 }
 0x2d1   : > { %v855_v53 = vadd.f32 0.00028619796, %v854_v43  ;;  %v866_v54 = vadd.f32 0.001143296, %v865_v51  ;;  %v2141_v47 = vmul.f32 0.70710677, %v2138_v52 }
 0x2d2   : > { %v848_v51 = vmul.f32 0.5, %v2135_v46 }
 0x2d3   : > { %v856_v56 = vmul.f32 %v855_v53, %v853_v40  ;;  %v867_v57 = vmul.f32 %v866_v54, %v853_v40  ;;  %v892_v50 = vmul.f32 %v2141_v47, %v2141_v47 }
 0x2d5   : > { %v868_v27 = vadd.f32 0.014752088, %v867_v57  ;;  %v857_v58 = vadd.f32 0.0036580483, %v856_v56  ;;  %v893_v59 = vmin.f32 %v892_v50, 16.0 }
 0x2d7   : > { %v869_v42 = vmul.f32 %v868_v27, %v853_v40  ;;  %v894_v60 = vmul.f32 2.1237322e-06, %v893_v59  ;;  %v905_v61 = vmul.f32 3.8918573e-05, %v893_v59  ;;  %v858_v62 = vmul.f32 %v857_v58, %v853_v40 }
 0x2d9   : > { %v870_v55 = vadd.f32 0.112945676, %v869_v42  ;;  %v895_v63 = vadd.f32 0.00028619796, %v894_v60  ;;  %v906_v38 = vadd.f32 0.001143296, %v905_v61 }
 0x2da   : > { %v859_v4 = vadd.f32 0.05243302, %v858_v62  ;;  %v849_v42 = vmul.f32 0.5, %v2138_v52 }
 0x2db   : > { %v871_v0 = vmul.f32 %v870_v55, %v853_v40  ;;  %v896_v1 = vmul.f32 %v895_v63, %v893_v59  ;;  %v907_v2 = vmul.f32 %v906_v38, %v893_v59 }
 0x2dc   : > { %v860_v10 = vmul.f32 %v859_v4, %v853_v40 }
 0x2dd   : > { %v872_v3 = vadd.f32 0.4994258, %v871_v0  ;;  %v908_v5 = vadd.f32 0.014752088, %v907_v2  ;;  %v897_v7 = vadd.f32 0.0036580483, %v896_v1 }
 0x2de   : > { %v861_v14 = vadd.f32 0.18741608, %v860_v10  ;;  %v1021_v2 = vld [vmem:[#allocation15] sm:$0xff] }
 0x2df   : > { %v873_v6 = vmul.f32 %v872_v3, %v853_v40  ;;  %v909_v8 = vmul.f32 %v908_v5, %v893_v59  ;;  %v898_v12 = vmul.f32 %v897_v7, %v893_v59  ;;  %1038 = vmatmul.f32.vlgmr.msrb.gmra.mxu2 %v1021_v2 }
 0x2e0   : > { %v862_v19 = vmul.f32 %v861_v14, %v853_v40 }
 0x2e1   : > { %v874_v9 = vadd.f32 1.0, %v873_v6  ;;  %v910_v11 = vadd.f32 0.112945676, %v909_v8  ;;  %v899_v16 = vadd.f32 0.05243302, %v898_v12  ;;  %v1734_v8 = vmov 0  }
 0x2e2   : > { %v863_v25 = vadd.f32 1.1283791, %v862_v19  ;;  %v1384_v6 = vld [vmem:[#allocation2] ss:$0 sm:$0xff]  ;;  %1377 = vset.pattern.permute.xlu0 %v1734_v8 }
 0x2e3   : > { %1393 = vrcp.f32 %v874_v9  ;;  %v911_v13 = vmul.f32 %v910_v11, %v893_v59  ;;  %v900_v22 = vmul.f32 %v899_v16, %v893_v59  ;;  %v886_v24 = vand.u32 2147483648, %v874_v9  ;;  %1066 = vperm.xlu0 %1377, %v1384_v6  }
 0x2e4   : > { %v884_v28 = vand.u32 2147483647, %v874_v9  ;;  %vm880_vm15 = vweird.f32 %v874_v9  ;;  %v864_v35 = vmul.f32 %v863_v25, %v850_v48 }
 0x2e5   : > { %v912_v15 = vadd.f32 0.4994258, %v911_v13  ;;  %v901_v30 = vadd.f32 0.18741608, %v900_v22  ;;  %v887_v34 = vor.u32 1.1754944e-38, %v886_v24 }
 0x2e6   : > { %vm885_vm1 = vcmp.eq.f32.partialorder %v884_v28, 8.507059e+37  ;;  %v1383_v24 = vld [vmem:[#allocation12] ss:$0 sm:$0xff] }
 0x2e7   : > { %v913_v17 = vmul.f32 %v912_v15, %v893_v59  ;;  %v902_v39 = vmul.f32 %v901_v30, %v893_v59  ;;  %v1020_v30 = vld [vmem:[%s2220_s24] sm:$0xff]  ;;  %s1661_s24 = scalar_lea.hbm %s2221_s13, 16 }
 0x2e8   : > { %p1663_p8 = scmp.lt.s32.totalorder %s1661_s24, %s1657_s16 }
 0x2e9   : > { %v1394_v18 = vpop.eup %1393  ;;  %v914_v21 = vadd.f32 1.0, %v913_v17  ;;  %v903_v40 = vadd.f32 1.1283791, %v902_v39 }
 0x2ea   : > { %v876_v20 = vmul.f32 %v1394_v18, %v874_v9  ;;  %vm881_vm14 = vweird.f32 %v1394_v18  ;;  %p1664_p7 = por %p1663_p8, %p1662_p12 }
 0x2eb   : > { %1395 = vrcp.f32 %v914_v21  ;;  %vm882_vm0 = vmor %vm880_vm15, %vm881_vm14  ;;  %v926_v29 = vand.u32 2147483648, %v914_v21  ;;  %v924_v43 = vand.u32 2147483647, %v914_v21  ;;  %vm920_vm3 = vweird.f32 %v914_v21 }
 0x2ec   : > { %v877_v23 = vsub.f32 1.0, %v876_v20  ;;  %v904_v57 = vmul.f32 %v903_v40, %v2141_v47  ;;  %p1665_p9 = pnand %p1664_p7, %p1660_p5 }
 0x2ed   : > { %v927_v48 = vor.u32 1.1754944e-38, %v926_v29  ;;  %vm925_vm5 = vcmp.eq.f32.partialorder %v924_v43, 8.507059e+37 }
 0x2ee   : > { %v878_v26 = vmul.f32 %v1394_v18, %v877_v23 }
 0x2f0   : > { %v879_v31 = vadd.f32 %v1394_v18, %v878_v26 }
 0x2f1   : > { %v1396_v32 = vpop.eup %1395 }
 0x2f2   : > { %v883_v33 = vsel %vm882_vm0, %v1394_v18, %v879_v31  ;;  %v916_v36 = vmul.f32 %v1396_v32, %v914_v21  ;;  %vm921_vm2 = vweird.f32 %v1396_v32  ;;  %v1382_v21 = vld [vmem:[#allocation11] ss:$0 sm:$0xff] }
 0x2f3   : > { %v888_v37 = vsel %vm885_vm1, %v887_v34, %v883_v33  ;;  %vm922_vm4 = vmor %vm920_vm3, %vm921_vm2 }
 0x2f4   : > { %v889_v41 = vmul.f32 %v888_v37, %v864_v35  ;;  %v917_v44 = vsub.f32 1.0, %v916_v36 }
 0x2f6   : > { %v1250_v45 = vclamps-f32 %v889_v41, 1.0  ;;  %v918_v49 = vmul.f32 %v1396_v32, %v917_v44 }
 0x2f8   : > { %v932_v53 = vadd.f32 1.0, %v1250_v45  ;;  %v919_v54 = vadd.f32 %v1396_v32, %v918_v49 }
 0x2fa   : > { %v934_v56 = vmul.f32 %v932_v53, %v848_v51  ;;  %v923_v50 = vsel %vm922_vm4, %v1396_v32, %v919_v54 }
 0x2fb   : > { %v928_v27 = vsel %vm925_vm5, %v927_v48, %v923_v50 }
 0x2fc   : > { %954 = vmatmul.f32.vlgmr.msrb.gmra.mxu0 %v934_v56  ;;  %v929_v58 = vmul.f32 %v928_v27, %v904_v57 }
 0x2fe   : > { %v1251_v59 = vclamps-f32 %v929_v58, 1.0 }
 0x300   : > { %v933_v60 = vadd.f32 1.0, %v1251_v59 }
 0x302   : > { %v935_v61 = vmul.f32 %v933_v60, %v849_v42 }
 0x304   : > { %957 = vmatmul.f32.gmra.mxu0 %v935_v61 }
 0x355   : > { %v1067_v32 = vpop.permute.xlu0 %1066 }
 0x362   : > { %v1039_v31 = vpop.f32.mrf.mxu2 }
 0x379   : > { %v955_v46 = vpop.f32.mrf.mxu0 }
 0x37a   : > { %v961_v55 = vsub.f32 %v934_v56, %v955_v46 }
 0x37c   : > { %v963_v62 = vmul.f32 %v961_v55, %v961_v55 }
 0x37e   : > { %981 = vmatmul.f32.vlgmr.msrb.gmra.mxu1 %v963_v62 }
 0x381   : > { %v958_v63 = vpop.f32.mrf.mxu0 }
 0x382   : > { %v962_v38 = vsub.f32 %v935_v61, %v958_v63 }
 0x384   : > { %v964_v0 = vmul.f32 %v962_v38, %v962_v38 }
 0x386   : > { %984 = vmatmul.f32.gmra.mxu1 %v964_v0 }
 0x3fb   : > { %v982_v47 = vpop.f32.mrf.mxu1 }
 0x3fc   : > { %v983_v1 = vadd.f32 1e-05, %v982_v47 }
 0x3fe   : > { %1397 = vrsqrt.f32 %v983_v1  ;;  %vm994_vm7 = vweird.f32 %v983_v1 }
 0x403   : > { %v985_v4 = vpop.f32.mrf.mxu1 }
 0x404   : > { %v1398_v3 = vpop.eup %1397  ;;  %v986_v52 = vadd.f32 1e-05, %v985_v4 }
 0x405   : > { %v989_v5 = vmul.f32 %v1398_v3, %v983_v1  ;;  %vm995_vm6 = vweird.f32 %v1398_v3 }
 0x406   : > { %1399 = vrsqrt.f32 %v986_v52  ;;  %vm996_vm9 = vmor %vm994_vm7, %vm995_vm6  ;;  %vm1004_vm10 = vweird.f32 %v986_v52 }
 0x407   : > { %v990_v7 = vmul.f32 %v1398_v3, %v989_v5 }
 0x409   : > { %v991_v9 = vmul.f32 0.5, %v990_v7 }
 0x40b   : > { %v992_v11 = vsub.f32 1.5, %v991_v9 }
 0x40c   : > { %v1400_v10 = vpop.eup %1399 }
 0x40d   : > { %v999_v12 = vmul.f32 %v1400_v10, %v986_v52  ;;  %v993_v14 = vmul.f32 %v1398_v3, %v992_v11  ;;  %vm1005_vm8 = vweird.f32 %v1400_v10 }
 0x40e   : > { %vm1006_vm11 = vmor %vm1004_vm10, %vm1005_vm8 }
 0x40f   : > { %v1000_v13 = vmul.f32 %v1400_v10, %v999_v12  ;;  %v997_v18 = vsel %vm996_vm9, %v1398_v3, %v993_v14 }
 0x410   : > { %v1008_v22 = vmul.f32 %v997_v18, %v961_v55 }
 0x411   : > { %v1001_v15 = vmul.f32 0.5, %v1000_v13 }
 0x412   : > { %v1013_v26 = vmul.f32 %v1382_v21, %v1008_v22 }
 0x413   : > { %v1002_v16 = vsub.f32 1.5, %v1001_v15 }
 0x414   : > { %v1018_v28 = vadd.f32 %v1383_v24, %v1013_v26 }
 0x415   : > { %v1003_v17 = vmul.f32 %v1400_v10, %v1002_v16 }
 0x417   : > { %v1007_v19 = vsel %vm1006_vm11, %v1400_v10, %v1003_v17 }
 0x418   : > { %v1009_v20 = vmul.f32 %v1007_v19, %v962_v38 }
 0x41a   : > { %v1014_v23 = vmul.f32 %v1382_v21, %v1009_v20 }
 0x41c   : > { %v1019_v25 = vadd.f32 %v1383_v24, %v1014_v23 }
 0x41e   : > { %1056 = vmatpush.xpose.msrb.mxu3 %v1019_v25 }
 0x422   : > { %1057 = vmatpush.xpose.msrb.mxu3 %v1018_v28 }
 0x425   : > { %1058 = vmatmul.f32.vlgmr.msrb.gmra.mxu3 %v1020_v30 }
 0x4a8   : > { %v1059_v34 = vpop.f32.mrf.mxu3 }
 0x4a9   : > { %v1060_v35 = vadd.f32 %v1059_v34, %v1039_v31 }
 0x4ab   : > { %v1069_v33 = vadd.f32 %v1067_v32, %v1060_v35 }
 0x4ad   : > { %1071 = vst.msk [vmem:[%s570_s18] sm:$0xff] %vm1070_vm12, %v1069_v33 }
 0x4ae   : > { %1668 = shalt.err (!%p1665_p9)
}
 0x4af   : > { %1287 = dma.vmem_to_hbm [thread:$0]  (%p1913_p13), %s1086_s23, 128, %s1088_s25, %s1073_s22  }
 0x4b0 PF: > { %s1099_s8 = sand.u32 1, %s1711_s27   ;;  %p2222_p10 = scmp.ge.s32.totalorder %s1723_s30, 2 }
 0x4b1   : > { %s1100_s1 = scalar_lea.sflag [#allocation5], %s1099_s8 }
 0x4b2   : > { %p1316_p11 = pnand %p2222_p10, %p1918_p4 }
 0x4b4   : > { %p1317_p0 = pneg %p1316_p11 }
 0x4b6   : > { %1706 = dma.done.wait (%p1317_p0), %s1100_s1, 128  }
 0x4b7   : > { %1708 = vsyncadd (%p1317_p0), %s1100_s1, 4294967168  ;;  %p32_p2 = scmp.ge.s32.totalorder %s1893_s15, 4   ;;  %s2223_s27 = smov %s1715_s28 }
 0x4b8   : > { %s2224_s28 = smov %s1719_s29  ;;  %s2225_s29 = smov %s1905_s14 }
 0x4b9   : > { %s2226_s30 = smov %s1893_s15  ;;  %34 = sbr.rel (!%p32_p2) target bundleno = 16 (0x10), region = 145 }
 0x4be   :  { %1106 = vsyncpa [#allocation4], 1 }
 0x4bf   :  { %1108 = vsyncpa [#allocation4 + $0x1], 1 }
 0x4c0   :  { %1109 = vsyncpa [#allocation7], 1 }
 0x4c1   :  { %1110 = vsyncpa [#allocation10], 1 }
 0x4c2   :  { %1111 = vsyncpa [#allocation13], 1 }
 0x4c3   :  { %1112 = vsyncpa [#allocation16], 1 }
 0x4c4   :  { %1113 = vsyncpa [#allocation5], 1 }
 0x4c5   :  { %1115 = vsyncpa [#allocation5 + $0x1], 1 }

</bundles_post_ra>
